<compile_context>
chip_gen: v7x
topology: tpu7x:2x2x1
jax: 0.10.0
libtpu: 0.0.40
codegen_flags: <defaults>
</compile_context>

<pallas_src>
import jax
import jax.numpy as jnp
from jax.experimental import pallas as pl
from jax.experimental.pallas import tpu as pltpu

LN_EPS = 1e-5  # torch.nn.LayerNorm default


def _classifier_kernel(x_ref, gamma_ref, beta_ref, w_ref, b_ref, o_ref):
    # x_ref:     (TN, E)    current row tile
    # gamma_ref: (1, E)     LayerNorm weight
    # beta_ref:  (1, E)     LayerNorm bias
    # w_ref:     (E, TC)    Linear weight^T (full C when resident, class tile otherwise)
    # b_ref:     (1, TC)    Linear bias (same tiling as w)
    # o_ref:     (TN, TC)
    x = x_ref[...].astype(jnp.float32)

    gamma = gamma_ref[...].astype(jnp.float32)   # (1, E)
    beta = beta_ref[...].astype(jnp.float32)     # (1, E)
    bias = b_ref[...].astype(jnp.float32)        # (1, TC)

    # One-pass LayerNorm statistics: the two reductions are independent
    # (no serial dep of the 2nd reduction on the mean subtract).
    e = x.shape[-1]
    inv_e = 1.0 / e
    s1 = jnp.sum(x, axis=-1, keepdims=True)
    s2 = jnp.sum(x * x, axis=-1, keepdims=True)
    mean = s1 * inv_e
    var = jnp.maximum(s2 * inv_e - mean * mean, 0.0)   # biased variance, as torch
    inv = jax.lax.rsqrt(var + LN_EPS)
    y = (x - mean) * (inv * gamma) + beta              # fused scale: one mul by (inv*gamma)

    # Linear head on the MXU. Operand dtype follows the prepared weight:
    # f32 for small/medium heads (exact), bf16 for large class-tiled heads.
    out = jnp.dot(y.astype(w_ref.dtype), w_ref[...],
                  preferred_element_type=jnp.float32)
    out = out + bias
    o_ref[...] = out.astype(o_ref.dtype)


def prepare_classifier_params(gamma, beta, weight, bias, *, class_tile=512,
                              weight_resident_bytes=6 << 20):
    """One-time parameter packing (hoisted out of the per-forward path).

    gamma/beta: [E]. weight: [C, E] (torch nn.Linear layout). bias: [C].
    """
    C, E = weight.shape
    if E * C * 4 <= weight_resident_bytes:
        # Small/medium head: full f32 weight stays resident (exact parity with
        # torch); no padding, output written directly with shape (N, C).
        w_t = weight.T.astype(jnp.float32)                 # (E, C)
        b2 = bias.reshape(1, C).astype(jnp.float32)
        tc = C
        grid_c = 1
    else:
        # Vocab-scale head: bf16 weight, class dim tiled (256-aligned tiles for
        # v6e/v7x MXU; also a multiple of 128 for v5e).
        tc = int(class_tile)
        Cp = ((C + tc - 1) // tc) * tc
        w_t = weight.T.astype(jnp.bfloat16)
        if Cp != C:
            w_t = jnp.pad(w_t, ((0, 0), (0, Cp - C)))
            b2 = jnp.pad(bias, (0, Cp - C)).reshape(1, Cp).astype(jnp.float32)
        else:
            b2 = bias.reshape(1, Cp).astype(jnp.float32)
        grid_c = Cp // tc
    return dict(gamma=gamma.reshape(1, E), beta=beta.reshape(1, E),
                w_t=w_t, b2=b2, E=E, C=C, tc=tc, grid_c=grid_c)


def _tpu_vmem_capacity_bytes():
    try:
        return int(pltpu.get_tpu_info().vmem_capacity_bytes)
    except Exception:
        return 64 << 20   # conservative default (v7x per-core VMEM)


def classifier_forward_prepared(x, params, *, out_dtype=None):
    """x: [..., E]; params from prepare_classifier_params."""
    E, C = params["E"], params["C"]
    tc, grid_c = params["tc"], params["grid_c"]
    gamma2, beta2 = params["gamma"], params["beta"]
    w_t, b2 = params["w_t"], params["b2"]

    orig_shape = x.shape
    assert orig_shape[-1] == E, (orig_shape, E)
    x2 = x.reshape(-1, E)
    N = x2.shape[0]
    out_dtype = x.dtype if out_dtype is None else out_dtype

    phys_vmem = _tpu_vmem_capacity_bytes()
    small_vmem_chip = phys_vmem <= (64 << 20)       # v7x: 64 MiB / core, 2 cores
    max_row_tile = 512 if small_vmem_chip else 1024  # 128-MiB chips take bigger tiles

    # Row tiling. Medium-N problems get >=2 grid steps so a 2-core chip can
    # shard the parallel row axis; tiny problems stay single-block.
    if N <= 16:
        row_tile = N
    elif N <= max_row_tile:
        half = -(-N // 2)
        row_tile = min(max_row_tile, ((half + 7) // 8) * 8)
    else:
        row_tile = max_row_tile
    grid_r = pl.cdiv(N, row_tile)

    resident_consts = grid_c == 1   # weight/bias blocks never change across the grid
    w_itemsize = jnp.dtype(w_t.dtype).itemsize
    out_itemsize = jnp.dtype(out_dtype).itemsize

    # VMEM budget: explicit buffer counts (no blanket hedge), clamped below
    # physical VMEM to leave compiler scratch headroom.
    vmem_bytes = (
        2 * row_tile * E * x2.dtype.itemsize                # x tiles (double-buffered)
        + 2 * row_tile * tc * out_itemsize                  # out tiles (double-buffered)
        + (1 if resident_consts else 2) * E * tc * w_itemsize
        + (1 if resident_consts else 2) * tc * 4            # bias
        + 2 * E * 4                                          # gamma, beta (single-buffered)
        + row_tile * (E + tc) * 4                            # f32 temporaries slack
    )
    cap = (48 << 20) if small_vmem_chip else (96 << 20)
    vmem_bytes = int(min(max(vmem_bytes, 4 << 20), cap))

    def _build(single_buffer_consts):
        def const_spec(shape, imap, singlable=True):
            if single_buffer_consts and singlable:
                return pl.BlockSpec(shape, imap, pipeline_mode=pl.Buffered(1))
            return pl.BlockSpec(shape, imap)

        in_specs = [
            pl.BlockSpec((row_tile, E), lambda i, j: (i, 0)),              # x tile
            const_spec((1, E), lambda i, j: (0, 0)),                       # gamma
            const_spec((1, E), lambda i, j: (0, 0)),                       # beta
            const_spec((E, tc), lambda i, j: (0, j), singlable=resident_consts),  # weight^T
            const_spec((1, tc), lambda i, j: (0, j), singlable=resident_consts),  # bias
        ]
        return pl.pallas_call(
            _classifier_kernel,
            out_shape=jax.ShapeDtypeStruct((N, C), out_dtype),
            grid_spec=pltpu.PrefetchScalarGridSpec(
                num_scalar_prefetch=0,
                grid=(grid_r, grid_c),
                in_specs=in_specs,
                out_specs=pl.BlockSpec((row_tile, tc), lambda i, j: (i, j)),
            ),
            compiler_params=pltpu.CompilerParams(
                dimension_semantics=("parallel", "parallel"),
                vmem_limit_bytes=vmem_bytes),
        )

    try:
        out = _build(True)(x2, gamma2, beta2, w_t, b2)
    except Exception:
        # Fallback in case this runtime rejects single-buffered constant blocks;
        # only costs the extra pipeline copy of the resident weight.
        out = _build(False)(x2, gamma2, beta2, w_t, b2)

    return out.reshape(*orig_shape[:-1], C)


def classifier_forward(x, gamma, beta, weight, bias, **kwargs):
    """Convenience one-shot wrapper (prefer preparing params once)."""
    params = prepare_classifier_params(gamma, beta, weight, bias)
    return classifier_forward_prepared(x, params, **kwargs)


def reference_forward(x, gamma, beta, weight, bias):
    mean = jnp.mean(x, axis=-1, keepdims=True)
    var = jnp.mean((x - mean) ** 2, axis=-1, keepdims=True)
    xn = (x - mean) / jnp.sqrt(var + LN_EPS)
    y = xn * gamma + beta
    return y @ weight.T + bias


if __name__ == "__main__":
    # Small shapes consistent with the module: x: [batch, seq, embed_dim]
    B, S, E, C = 2, 8, 32, 10

    key = jax.random.PRNGKey(0)
    kx, kw, kb, kg, kbe = jax.random.split(key, 5)

    x = jax.random.normal(kx, (B, S, E), dtype=jnp.float32)

    # Deterministic parameter init (shapes per nn.LayerNorm(E), nn.Linear(E, C)).
    gamma = 1.0 + 0.1 * jax.random.normal(kg, (E,), jnp.float32)   # LayerNorm weight
    beta = 0.1 * jax.random.normal(kbe, (E,), jnp.float32)         # LayerNorm bias
    bound = 1.0 / (E ** 0.5)
    weight = jax.random.uniform(kw, (C, E), jnp.float32, -bound, bound)  # torch Linear layout
    bias = jax.random.uniform(kb, (C,), jnp.float32, -bound, bound)

    # Prepare params once (weight transpose/cast hoisted out of the forward path).
    params = prepare_classifier_params(gamma, beta, weight, bias)

    out = classifier_forward_prepared(x, params)
    out = jax.block_until_ready(out)

    ref = reference_forward(x, gamma, beta, weight, bias)
    assert out.shape == (B, S, C), out.shape
    err = float(jnp.max(jnp.abs(out - ref)))
    # Small-head path keeps f32 matmul operands -> near-exact parity with torch.
    assert jnp.allclose(out, ref, atol=1e-4, rtol=1e-4), err

    print("KERNEL_OK")
</pallas_src>

<mosaic_0001>
module attributes {stable_mosaic.version = 11 : i64} {
  func.func @_classifier_kernel(%arg0: i32, %arg1: i32, %arg2: memref<16x32xf32, #tpu.memory_space<vmem>>, %arg3: memref<1x32xf32, #tpu.memory_space<vmem>>, %arg4: memref<1x32xf32, #tpu.memory_space<vmem>>, %arg5: memref<32x10xf32, #tpu.memory_space<vmem>>, %arg6: memref<1x10xf32, #tpu.memory_space<vmem>>, %arg7: memref<16x10xf32, #tpu.memory_space<vmem>>) attributes {dimension_semantics = [#tpu.dimension_semantics<parallel>, #tpu.dimension_semantics<parallel>], iteration_bounds = array<i64: 1, 1>, scalar_prefetch = 0 : i64, scratch_operands = 0 : i64, tpu.core_type = #tpu.core_type<tc>, window_params = [{transform_indices = @transform_0, window_bounds = array<i64: 16, 32>}, {pipeline_mode = #tpu.pipeline_mode<synchronous>, transform_indices = @transform_1, window_bounds = array<i64: 1, 32>}, {pipeline_mode = #tpu.pipeline_mode<synchronous>, transform_indices = @transform_2, window_bounds = array<i64: 1, 32>}, {pipeline_mode = #tpu.pipeline_mode<synchronous>, transform_indices = @transform_3, window_bounds = array<i64: 32, 10>}, {pipeline_mode = #tpu.pipeline_mode<synchronous>, transform_indices = @transform_4, window_bounds = array<i64: 1, 10>}, {transform_indices = @transform_5, window_bounds = array<i64: 16, 10>}]} {
    %c0 = arith.constant 0 : index
    %c0_0 = arith.constant 0 : index
    %0 = vector.load %arg2[%c0, %c0_0] : memref<16x32xf32, #tpu.memory_space<vmem>>, vector<16x32xf32>
    %c0_1 = arith.constant 0 : index
    %c0_2 = arith.constant 0 : index
    %1 = vector.load %arg3[%c0_1, %c0_2] : memref<1x32xf32, #tpu.memory_space<vmem>>, vector<1x32xf32>
    %c0_3 = arith.constant 0 : index
    %c0_4 = arith.constant 0 : index
    %2 = vector.load %arg4[%c0_3, %c0_4] : memref<1x32xf32, #tpu.memory_space<vmem>>, vector<1x32xf32>
    %c0_5 = arith.constant 0 : index
    %c0_6 = arith.constant 0 : index
    %3 = vector.load %arg6[%c0_5, %c0_6] : memref<1x10xf32, #tpu.memory_space<vmem>>, vector<1x10xf32>
    %cst = arith.constant dense<0.000000e+00> : vector<16xf32>
    %4 = vector.multi_reduction <add>, %0, %cst [1] : vector<16x32xf32> to vector<16xf32>
    %5 = vector.shape_cast %4 : vector<16xf32> to vector<16x1xf32>
    %6 = arith.mulf %0, %0 : vector<16x32xf32>
    %cst_7 = arith.constant dense<0.000000e+00> : vector<16xf32>
    %7 = vector.multi_reduction <add>, %6, %cst_7 [1] : vector<16x32xf32> to vector<16xf32>
    %8 = vector.shape_cast %7 : vector<16xf32> to vector<16x1xf32>
    %cst_8 = arith.constant 3.125000e-02 : f32
    %9 = vector.broadcast %cst_8 : f32 to vector<16x1xf32>
    %10 = arith.mulf %5, %9 : vector<16x1xf32>
    %cst_9 = arith.constant 3.125000e-02 : f32
    %11 = vector.broadcast %cst_9 : f32 to vector<16x1xf32>
    %12 = arith.mulf %8, %11 : vector<16x1xf32>
    %13 = arith.mulf %10, %10 : vector<16x1xf32>
    %14 = arith.subf %12, %13 : vector<16x1xf32>
    %cst_10 = arith.constant 0.000000e+00 : f32
    %15 = vector.broadcast %cst_10 : f32 to vector<16x1xf32>
    %16 = arith.maximumf %14, %15 : vector<16x1xf32>
    %cst_11 = arith.constant 9.99999974E-6 : f32
    %17 = vector.broadcast %cst_11 : f32 to vector<16x1xf32>
    %18 = arith.addf %16, %17 : vector<16x1xf32>
    %19 = math.rsqrt %18 : vector<16x1xf32>
    %20 = vector.broadcast %10 : vector<16x1xf32> to vector<16x32xf32>
    %21 = arith.subf %0, %20 : vector<16x32xf32>
    %22 = vector.broadcast %19 : vector<16x1xf32> to vector<16x32xf32>
    %23 = vector.broadcast %1 : vector<1x32xf32> to vector<16x32xf32>
    %24 = arith.mulf %22, %23 : vector<16x32xf32>
    %25 = arith.mulf %21, %24 : vector<16x32xf32>
    %26 = vector.broadcast %2 : vector<1x32xf32> to vector<16x32xf32>
    %27 = arith.addf %25, %26 : vector<16x32xf32>
    %c0_12 = arith.constant 0 : index
    %c0_13 = arith.constant 0 : index
    %28 = vector.load %arg5[%c0_12, %c0_13] : memref<32x10xf32, #tpu.memory_space<vmem>>, vector<32x10xf32>
    %cst_14 = arith.constant dense<0.000000e+00> : vector<16x10xf32>
    %29 = tpu.matmul %27, %28, %cst_14 {dimension_numbers = #tpu.dot_dimension_numbers<[1], [0], [0], [1], [0, 0, 1, 1], [], []>} : vector<16x32xf32>, vector<32x10xf32>, vector<16x10xf32> -> vector<16x10xf32>
    %30 = vector.broadcast %3 : vector<1x10xf32> to vector<16x10xf32>
    %31 = arith.addf %29, %30 : vector<16x10xf32>
    %c0_15 = arith.constant 0 : index
    %c0_16 = arith.constant 0 : index
    %32 = vector.load %arg7[%c0_15, %c0_16] : memref<16x10xf32, #tpu.memory_space<vmem>>, vector<16x10xf32>
    tpu.vector_store %arg7[%c0_15, %c0_16], %31 {strides = array<i32>} : memref<16x10xf32, #tpu.memory_space<vmem>>, vector<16x10xf32>,
    return
  }
  func.func @transform_0(%arg0: i32, %arg1: i32) -> (i32, i32) {
    %c0_i32 = arith.constant 0 : i32
    %c0_i32_0 = arith.constant 0 : i32
    return %arg0, %c0_i32 : i32, i32
  }
  func.func @transform_1(%arg0: i32, %arg1: i32) -> (i32, i32) {
    %c0_i32 = arith.constant 0 : i32
    %c0_i32_0 = arith.constant 0 : i32
    %c0_i32_1 = arith.constant 0 : i32
    return %c0_i32, %c0_i32_0 : i32, i32
  }
  func.func @transform_2(%arg0: i32, %arg1: i32) -> (i32, i32) {
    %c0_i32 = arith.constant 0 : i32
    %c0_i32_0 = arith.constant 0 : i32
    %c0_i32_1 = arith.constant 0 : i32
    return %c0_i32, %c0_i32_0 : i32, i32
  }
  func.func @transform_3(%arg0: i32, %arg1: i32) -> (i32, i32) {
    %c0_i32 = arith.constant 0 : i32
    %c0_i32_0 = arith.constant 0 : i32
    return %c0_i32, %arg1 : i32, i32
  }
  func.func @transform_4(%arg0: i32, %arg1: i32) -> (i32, i32) {
    %c0_i32 = arith.constant 0 : i32
    %c0_i32_0 = arith.constant 0 : i32
    return %c0_i32, %arg1 : i32, i32
  }
  func.func @transform_5(%arg0: i32, %arg1: i32) -> (i32, i32) {
    %c0_i32 = arith.constant 0 : i32
    return %arg0, %arg1 : i32, i32
  }
}

module attributes {stable_mosaic.version = 11 : i64} {
  func.func @_classifier_kernel(%arg0: i32, %arg1: i32, %arg2: memref<16x32xf32, #tpu.memory_space<vmem>>, %arg3: memref<1x32xf32, #tpu.memory_space<vmem>>, %arg4: memref<1x32xf32, #tpu.memory_space<vmem>>, %arg5: memref<32x10xf32, #tpu.memory_space<vmem>>, %arg6: memref<1x10xf32, #tpu.memory_space<vmem>>, %arg7: memref<16x10xf32, #tpu.memory_space<vmem>>) attributes {dimension_semantics = [#tpu.dimension_semantics<parallel>, #tpu.dimension_semantics<parallel>], iteration_bounds = array<i64: 1, 1>, scalar_prefetch = 0 : i64, scratch_operands = 0 : i64, tpu.core_type = #tpu.core_type<tc>, window_params = [{transform_indices = @transform_0, window_bounds = array<i64: 16, 32>}, {pipeline_mode = #tpu.pipeline_mode<synchronous>, transform_indices = @transform_1, window_bounds = array<i64: 1, 32>}, {pipeline_mode = #tpu.pipeline_mode<synchronous>, transform_indices = @transform_2, window_bounds = array<i64: 1, 32>}, {transform_indices = @transform_3, window_bounds = array<i64: 32, 10>}, {transform_indices = @transform_4, window_bounds = array<i64: 1, 10>}, {transform_indices = @transform_5, window_bounds = array<i64: 16, 10>}]} {
    %c0 = arith.constant 0 : index
    %c0_0 = arith.constant 0 : index
    %0 = vector.load %arg2[%c0, %c0_0] : memref<16x32xf32, #tpu.memory_space<vmem>>, vector<16x32xf32>
    %c0_1 = arith.constant 0 : index
    %c0_2 = arith.constant 0 : index
    %1 = vector.load %arg3[%c0_1, %c0_2] : memref<1x32xf32, #tpu.memory_space<vmem>>, vector<1x32xf32>
    %c0_3 = arith.constant 0 : index
    %c0_4 = arith.constant 0 : index
    %2 = vector.load %arg4[%c0_3, %c0_4] : memref<1x32xf32, #tpu.memory_space<vmem>>, vector<1x32xf32>
    %c0_5 = arith.constant 0 : index
    %c0_6 = arith.constant 0 : index
    %3 = vector.load %arg6[%c0_5, %c0_6] : memref<1x10xf32, #tpu.memory_space<vmem>>, vector<1x10xf32>
    %cst = arith.constant dense<0.000000e+00> : vector<16xf32>
    %4 = vector.multi_reduction <add>, %0, %cst [1] : vector<16x32xf32> to vector<16xf32>
    %5 = vector.shape_cast %4 : vector<16xf32> to vector<16x1xf32>
    %6 = arith.mulf %0, %0 : vector<16x32xf32>
    %cst_7 = arith.constant dense<0.000000e+00> : vector<16xf32>
    %7 = vector.multi_reduction <add>, %6, %cst_7 [1] : vector<16x32xf32> to vector<16xf32>
    %8 = vector.shape_cast %7 : vector<16xf32> to vector<16x1xf32>
    %cst_8 = arith.constant 3.125000e-02 : f32
    %9 = vector.broadcast %cst_8 : f32 to vector<16x1xf32>
    %10 = arith.mulf %5, %9 : vector<16x1xf32>
    %cst_9 = arith.constant 3.125000e-02 : f32
    %11 = vector.broadcast %cst_9 : f32 to vector<16x1xf32>
    %12 = arith.mulf %8, %11 : vector<16x1xf32>
    %13 = arith.mulf %10, %10 : vector<16x1xf32>
    %14 = arith.subf %12, %13 : vector<16x1xf32>
    %cst_10 = arith.constant 0.000000e+00 : f32
    %15 = vector.broadcast %cst_10 : f32 to vector<16x1xf32>
    %16 = arith.maximumf %14, %15 : vector<16x1xf32>
    %cst_11 = arith.constant 9.99999974E-6 : f32
    %17 = vector.broadcast %cst_11 : f32 to vector<16x1xf32>
    %18 = arith.addf %16, %17 : vector<16x1xf32>
    %19 = math.rsqrt %18 : vector<16x1xf32>
    %20 = vector.broadcast %10 : vector<16x1xf32> to vector<16x32xf32>
    %21 = arith.subf %0, %20 : vector<16x32xf32>
    %22 = vector.broadcast %19 : vector<16x1xf32> to vector<16x32xf32>
    %23 = vector.broadcast %1 : vector<1x32xf32> to vector<16x32xf32>
    %24 = arith.mulf %22, %23 : vector<16x32xf32>
    %25 = arith.mulf %21, %24 : vector<16x32xf32>
    %26 = vector.broadcast %2 : vector<1x32xf32> to vector<16x32xf32>
    %27 = arith.addf %25, %26 : vector<16x32xf32>
    %c0_12 = arith.constant 0 : index
    %c0_13 = arith.constant 0 : index
    %28 = vector.load %arg5[%c0_12, %c0_13] : memref<32x10xf32, #tpu.memory_space<vmem>>, vector<32x10xf32>
    %cst_14 = arith.constant dense<0.000000e+00> : vector<16x10xf32>
    %29 = tpu.matmul %27, %28, %cst_14 {dimension_numbers = #tpu.dot_dimension_numbers<[1], [0], [0], [1], [0, 0, 1, 1], [], []>} : vector<16x32xf32>, vector<32x10xf32>, vector<16x10xf32> -> vector<16x10xf32>
    %30 = vector.broadcast %3 : vector<1x10xf32> to vector<16x10xf32>
    %31 = arith.addf %29, %30 : vector<16x10xf32>
    %c0_15 = arith.constant 0 : index
    %c0_16 = arith.constant 0 : index
    %32 = vector.load %arg7[%c0_15, %c0_16] : memref<16x10xf32, #tpu.memory_space<vmem>>, vector<16x10xf32>
    tpu.vector_store %arg7[%c0_15, %c0_16], %31 {strides = array<i32>} : memref<16x10xf32, #tpu.memory_space<vmem>>, vector<16x10xf32>,
    return
  }
  func.func @transform_0(%arg0: i32, %arg1: i32) -> (i32, i32) {
    %c0_i32 = arith.constant 0 : i32
    %c0_i32_0 = arith.constant 0 : i32
    return %arg0, %c0_i32 : i32, i32
  }
  func.func @transform_1(%arg0: i32, %arg1: i32) -> (i32, i32) {
    %c0_i32 = arith.constant 0 : i32
    %c0_i32_0 = arith.constant 0 : i32
    %c0_i32_1 = arith.constant 0 : i32
    return %c0_i32, %c0_i32_0 : i32, i32
  }
  func.func @transform_2(%arg0: i32, %arg1: i32) -> (i32, i32) {
    %c0_i32 = arith.constant 0 : i32
    %c0_i32_0 = arith.constant 0 : i32
    %c0_i32_1 = arith.constant 0 : i32
    return %c0_i32, %c0_i32_0 : i32, i32
  }
  func.func @transform_3(%arg0: i32, %arg1: i32) -> (i32, i32) {
    %c0_i32 = arith.constant 0 : i32
    %c0_i32_0 = arith.constant 0 : i32
    return %c0_i32, %arg1 : i32, i32
  }
  func.func @transform_4(%arg0: i32, %arg1: i32) -> (i32, i32) {
    %c0_i32 = arith.constant 0 : i32
    %c0_i32_0 = arith.constant 0 : i32
    return %c0_i32, %arg1 : i32, i32
  }
  func.func @transform_5(%arg0: i32, %arg1: i32) -> (i32, i32) {
    %c0_i32 = arith.constant 0 : i32
    return %arg0, %arg1 : i32, i32
  }
}

</mosaic_0001>

<bundles_post_ra>
// kernel: tpu_custom_call.1
= control target key start
LH: loop header
LB: loop body
LE: loop exit
PB: predicated region body
PF: predicated region fallthrough
CT: control target
= control target key end

     0   :  { %vm26_vm0 = vcmask 261120   ;;  %s324_s0 = inlined_call_operand.vmem [shape: f32[16,32], index: 0, kind: input, shape index: {}]   ;;  %s325_s1 = inlined_call_operand.vmem [shape: f32[1,32], index: 1, kind: input, shape index: {}]   ;;  %s326_s2 = inlined_call_operand.vmem [shape: f32[1,32], index: 2, kind: input, shape index: {}]   ;;  %s327_s3 = inlined_call_operand.vmem [shape: f32[32,10], index: 3, kind: input, shape index: {}]   ;;  %s328_s4 = inlined_call_operand.vmem [shape: f32[1,10], index: 4, kind: input, shape index: {}]   ;;  %s329_s5 = inlined_call_operand.hbm [shape: f32[16,10], index: 5, kind: output, shape index: {}]  }
   0x1   :  { %v21_v0 = vld [vmem:[%s324_s0] sm:$0xff]  ;;  %v22_v1 = vld [vmem:[%s324_s0 + $0x8] sm:$0xff] }
   0x2   :  { %10 = vsyncpa [#allocation3], 0  ;;  %v27_v2 = vsel %vm26_vm0, %v21_v0, 0.0  ;;  %v33_v3 = vmul.f32 %v21_v0, %v21_v0  ;;  %v34_v4 = vmul.f32 %v22_v1, %v22_v1  ;;  %v30_v6 = vsel %vm26_vm0, %v22_v1, 0.0  ;;  %v75_v8 = vld [vmem:[%s327_s3] sm:$0xff]  ;;  %v76_v9 = vld [vmem:[%s327_s3 + $0x8] sm:$0xff] }
   0x3   :  { %28 = vadd.xlane.f32.xlu0 %v27_v2  ;;  %v77_v10 = vld [vmem:[%s327_s3 + $0x10] sm:$0xff]  ;;  %v207_v11 = vpack.c.bf16 %v76_v9, %v75_v8  ;;  %v78_v12 = vld [vmem:[%s327_s3 + $0x18] sm:$0xff]  ;;  %v185_v30 = vld [vmem:[%s325_s1] ss:$0 sm:$0xff]  ;;  %s246_s8 = smov [#allocation2]   ;;  %vm166_vm1 = vcmask 80896  }
   0x4   :  { %v35_v5 = vsel %vm26_vm0, %v33_v3, 0.0  ;;  %v38_v7 = vsel %vm26_vm0, %v34_v4, 0.0  ;;  %v211_v13 = vpack.c.bf16 %v78_v12, %v77_v10  ;;  %v186_v34 = vld [vmem:[%s326_s2] ss:$0 sm:$0xff]  ;;  %s174_s9 = sshll.u32 %s246_s8, 4  ;;  %s175_s9 = int_to_ptr.vmem [resolvable:$true] %s174_s9 }
   0x5   :  { %36 = vadd.xlane.f32.xlu1 %v35_v5  ;;  %208 = vmatprep.subr.bf16.mxu0 %v207_v11  ;;  %v187_v42 = vld [vmem:[%s328_s4] ss:$0 sm:$0xff]  ;;  %s222_s2 = scalar_lea.vmem %s175_s9, 256  ;;  %p227_p1 = scmp.lt.s32.totalorder %s175_s9, %s175_s9 }
   0x6   :  { %210 = vmatpush3.bf16.msra.mxu0 %v207_v11  ;;  %p223_p0 = scmp.ne.s32.totalorder %s175_s9, %s222_s2  ;;  %p228_p2 = scmp.lt.s32.totalorder %s222_s2, %s222_s2 }
   0x7   :  { %31 = vadd.xlane.f32.xlu0 %v30_v6  ;;  %212 = vmatprep.subr.bf16.mxu0 %v211_v13 }
   0x8   :  { %p229_p3 = por %p228_p2, %p227_p1 }
   0x9   :  { %39 = vadd.xlane.f32.xlu1 %v38_v7 }
   0xa   :  { %214 = vmatpush3.bf16.msra.mxu0 %v211_v13  ;;  %p230_p4 = pnand %p229_p3, %p223_p0 }
  0x90   :  { %v29_v14 = vpop.xlane.xlu0 %28 }
  0x91   :  { %v41_v15 = vmul.f32 0.03125, %v29_v14 }
  0x92   :  { %v37_v16 = vpop.xlane.xlu1 %36 }
  0x93   :  { %v45_v17 = vmul.f32 %v41_v15, %v41_v15  ;;  %v43_v18 = vmul.f32 0.03125, %v37_v16  ;;  %v55_v32 = vsub.f32 %v21_v0, %v41_v15 }
  0x94   :  { %v32_v19 = vpop.xlane.xlu0 %31 }
  0x95   :  { %v47_v20 = vsub.f32 %v43_v18, %v45_v17  ;;  %v42_v21 = vmul.f32 0.03125, %v32_v19 }
  0x96   :  { %v40_v22 = vpop.xlane.xlu1 %39 }
  0x97   :  { %v49_v23 = vmax.f32 %v47_v20, 0.0  ;;  %v46_v24 = vmul.f32 %v42_v21, %v42_v21  ;;  %v44_v25 = vmul.f32 0.03125, %v40_v22  ;;  %v56_v37 = vsub.f32 %v22_v1, %v42_v21 }
  0x99   :  { %v51_v26 = vadd.f32 1e-05, %v49_v23  ;;  %v48_v27 = vsub.f32 %v44_v25, %v46_v24 }
  0x9b   :  { %218 = vrsqrt.f32 %v51_v26  ;;  %v50_v28 = vmax.f32 %v48_v27, 0.0 }
  0x9d   :  { %v52_v29 = vadd.f32 1e-05, %v50_v28 }
  0x9f   :  { %220 = vrsqrt.f32 %v52_v29 }
  0xa5   :  { %v219_v31 = vpop.eup %218 }
  0xa6   :  { %v63_v33 = vmul.f32 %v219_v31, %v185_v30 }
  0xa8   :  { %v65_v35 = vmul.f32 %v63_v33, %v55_v32 }
  0xa9   :  { %v221_v36 = vpop.eup %220 }
  0xaa   :  { %v64_v38 = vmul.f32 %v221_v36, %v185_v30  ;;  %v73_v39 = vadd.f32 %v186_v34, %v65_v35 }
  0xac   :  { %v66_v40 = vmul.f32 %v64_v38, %v56_v37  ;;  %204 = vmatprep.mubr.msk.f32.mxu0 %vm26_vm0, %v73_v39 }
  0xae   :  { %v74_v41 = vadd.f32 %v186_v34, %v66_v40 }
  0xb0   :  { %205 = vmatmul.mubr.msk.f32.vlgmr.msra.gmra.mrb[0].mxu0 %vm26_vm0, %v74_v41 }
 0x183   :  { %v206_v43 = vpop.f32.mrb[0].mxu0 }
 0x184   :  { %v163_v44 = vadd.f32 %v206_v43, %v187_v42  ;;  %v157_v45 = vpop.f32.mrb[1].mxu0 }
 0x185   :  { %v158_v46 = vadd.f32 %v187_v42, %v157_v45 }
 0x186   :  { %168 = vst.msk [vmem:[#allocation2 + $0x8] sm:$0xff] %vm166_vm1, %v163_v44 }
 0x187   :  { %167 = vst.msk [vmem:[#allocation2] sm:$0xff] %vm166_vm1, %v158_v46 }
 0x188   :  { %233 = shalt.err (!%p230_p4)
}
 0x189   :  { %s234_s4 = scalar_lea.hbm %s329_s5, 256 }
 0x18a   :  { %p235_p5 = scmp.ne.s32.totalorder %s329_s5, %s234_s4  ;;  %p238_p6 = scmp.lt.u32.totalorder %s234_s4, %s329_s5 }
 0x18c   :  { %p240_p7 = pnand %p238_p6, %p235_p5 }
 0x18e   :  { %243 = shalt.err (!%p240_p7)
}
 0x18f   :  { %s247_s16 = smov 128   ;;  %s248_s17 = smov 8  }
 0x190   :  { %180 = dma.vmem_to_hbm [thread:$0]  %s175_s9, 256, %s329_s5, [#allocation3], %s247_s16, %s247_s16, %s248_s17  }
 0x191   :  { %244 = dma.done.wait [#allocation3], 256  }
 0x192   :  { %245 = vsyncadd [#allocation3], 4294967040 }
 0x193   :  { %184 = vsyncpa [#allocation3], 1 }

// kernel: tpu_custom_call.1
= control target key start
LH: loop header
LB: loop body
LE: loop exit
PB: predicated region body
PF: predicated region fallthrough
CT: control target
= control target key end

     0   :  { %vm26_vm0 = vcmask 261120   ;;  %s324_s0 = inlined_call_operand.vmem [shape: f32[16,32], index: 0, kind: input, shape index: {}]   ;;  %s325_s1 = inlined_call_operand.vmem [shape: f32[1,32], index: 1, kind: input, shape index: {}]   ;;  %s326_s2 = inlined_call_operand.vmem [shape: f32[1,32], index: 2, kind: input, shape index: {}]   ;;  %s327_s3 = inlined_call_operand.vmem [shape: f32[32,10], index: 3, kind: input, shape index: {}]   ;;  %s328_s4 = inlined_call_operand.vmem [shape: f32[1,10], index: 4, kind: input, shape index: {}]   ;;  %s329_s5 = inlined_call_operand.hbm [shape: f32[16,10], index: 5, kind: output, shape index: {}]  }
   0x1   :  { %v21_v0 = vld [vmem:[%s324_s0] sm:$0xff]  ;;  %v22_v1 = vld [vmem:[%s324_s0 + $0x8] sm:$0xff] }
   0x2   :  { %10 = vsyncpa [#allocation3], 0  ;;  %v27_v2 = vsel %vm26_vm0, %v21_v0, 0.0  ;;  %v33_v3 = vmul.f32 %v21_v0, %v21_v0  ;;  %v34_v4 = vmul.f32 %v22_v1, %v22_v1  ;;  %v30_v6 = vsel %vm26_vm0, %v22_v1, 0.0  ;;  %v75_v8 = vld [vmem:[%s327_s3] sm:$0xff]  ;;  %v76_v9 = vld [vmem:[%s327_s3 + $0x8] sm:$0xff] }
   0x3   :  { %28 = vadd.xlane.f32.xlu0 %v27_v2  ;;  %v77_v10 = vld [vmem:[%s327_s3 + $0x10] sm:$0xff]  ;;  %v207_v11 = vpack.c.bf16 %v76_v9, %v75_v8  ;;  %v78_v12 = vld [vmem:[%s327_s3 + $0x18] sm:$0xff]  ;;  %v185_v30 = vld [vmem:[%s325_s1] ss:$0 sm:$0xff]  ;;  %s246_s8 = smov [#allocation2]   ;;  %vm166_vm1 = vcmask 80896  }
   0x4   :  { %v35_v5 = vsel %vm26_vm0, %v33_v3, 0.0  ;;  %v38_v7 = vsel %vm26_vm0, %v34_v4, 0.0  ;;  %v211_v13 = vpack.c.bf16 %v78_v12, %v77_v10  ;;  %v186_v34 = vld [vmem:[%s326_s2] ss:$0 sm:$0xff]  ;;  %s174_s9 = sshll.u32 %s246_s8, 4  ;;  %s175_s9 = int_to_ptr.vmem [resolvable:$true] %s174_s9 }
   0x5   :  { %36 = vadd.xlane.f32.xlu1 %v35_v5  ;;  %208 = vmatprep.subr.bf16.mxu0 %v207_v11  ;;  %v187_v42 = vld [vmem:[%s328_s4] ss:$0 sm:$0xff]  ;;  %s222_s2 = scalar_lea.vmem %s175_s9, 256  ;;  %p227_p1 = scmp.lt.s32.totalorder %s175_s9, %s175_s9 }
   0x6   :  { %210 = vmatpush3.bf16.msra.mxu0 %v207_v11  ;;  %p223_p0 = scmp.ne.s32.totalorder %s175_s9, %s222_s2  ;;  %p228_p2 = scmp.lt.s32.totalorder %s222_s2, %s222_s2 }
   0x7   :  { %31 = vadd.xlane.f32.xlu0 %v30_v6  ;;  %212 = vmatprep.subr.bf16.mxu0 %v211_v13 }
   0x8   :  { %p229_p3 = por %p228_p2, %p227_p1 }
   0x9   :  { %39 = vadd.xlane.f32.xlu1 %v38_v7 }
   0xa   :  { %214 = vmatpush3.bf16.msra.mxu0 %v211_v13  ;;  %p230_p4 = pnand %p229_p3, %p223_p0 }
  0x90   :  { %v29_v14 = vpop.xlane.xlu0 %28 }
  0x91   :  { %v41_v15 = vmul.f32 0.03125, %v29_v14 }
  0x92   :  { %v37_v16 = vpop.xlane.xlu1 %36 }
  0x93   :  { %v45_v17 = vmul.f32 %v41_v15, %v41_v15  ;;  %v43_v18 = vmul.f32 0.03125, %v37_v16  ;;  %v55_v32 = vsub.f32 %v21_v0, %v41_v15 }
  0x94   :  { %v32_v19 = vpop.xlane.xlu0 %31 }
  0x95   :  { %v47_v20 = vsub.f32 %v43_v18, %v45_v17  ;;  %v42_v21 = vmul.f32 0.03125, %v32_v19 }
  0x96   :  { %v40_v22 = vpop.xlane.xlu1 %39 }
  0x97   :  { %v49_v23 = vmax.f32 %v47_v20, 0.0  ;;  %v46_v24 = vmul.f32 %v42_v21, %v42_v21  ;;  %v44_v25 = vmul.f32 0.03125, %v40_v22  ;;  %v56_v37 = vsub.f32 %v22_v1, %v42_v21 }
  0x99   :  { %v51_v26 = vadd.f32 1e-05, %v49_v23  ;;  %v48_v27 = vsub.f32 %v44_v25, %v46_v24 }
  0x9b   :  { %218 = vrsqrt.f32 %v51_v26  ;;  %v50_v28 = vmax.f32 %v48_v27, 0.0 }
  0x9d   :  { %v52_v29 = vadd.f32 1e-05, %v50_v28 }
  0x9f   :  { %220 = vrsqrt.f32 %v52_v29 }
  0xa5   :  { %v219_v31 = vpop.eup %218 }
  0xa6   :  { %v63_v33 = vmul.f32 %v219_v31, %v185_v30 }
  0xa8   :  { %v65_v35 = vmul.f32 %v63_v33, %v55_v32 }
  0xa9   :  { %v221_v36 = vpop.eup %220 }
  0xaa   :  { %v64_v38 = vmul.f32 %v221_v36, %v185_v30  ;;  %v73_v39 = vadd.f32 %v186_v34, %v65_v35 }
  0xac   :  { %v66_v40 = vmul.f32 %v64_v38, %v56_v37  ;;  %204 = vmatprep.mubr.msk.f32.mxu0 %vm26_vm0, %v73_v39 }
  0xae   :  { %v74_v41 = vadd.f32 %v186_v34, %v66_v40 }
  0xb0   :  { %205 = vmatmul.mubr.msk.f32.vlgmr.msra.gmra.mrb[0].mxu0 %vm26_vm0, %v74_v41 }
 0x183   :  { %v206_v43 = vpop.f32.mrb[0].mxu0 }
 0x184   :  { %v163_v44 = vadd.f32 %v206_v43, %v187_v42  ;;  %v157_v45 = vpop.f32.mrb[1].mxu0 }
 0x185   :  { %v158_v46 = vadd.f32 %v187_v42, %v157_v45 }
 0x186   :  { %168 = vst.msk [vmem:[#allocation2 + $0x8] sm:$0xff] %vm166_vm1, %v163_v44 }
 0x187   :  { %167 = vst.msk [vmem:[#allocation2] sm:$0xff] %vm166_vm1, %v158_v46 }
 0x188   :  { %233 = shalt.err (!%p230_p4)
}
 0x189   :  { %s234_s4 = scalar_lea.hbm %s329_s5, 256 }
 0x18a   :  { %p235_p5 = scmp.ne.s32.totalorder %s329_s5, %s234_s4  ;;  %p238_p6 = scmp.lt.u32.totalorder %s234_s4, %s329_s5 }
 0x18c   :  { %p240_p7 = pnand %p238_p6, %p235_p5 }
 0x18e   :  { %243 = shalt.err (!%p240_p7)
}
 0x18f   :  { %s247_s16 = smov 128   ;;  %s248_s17 = smov 8  }
 0x190   :  { %180 = dma.vmem_to_hbm [thread:$0]  %s175_s9, 256, %s329_s5, [#allocation3], %s247_s16, %s247_s16, %s248_s17  }
 0x191   :  { %244 = dma.done.wait [#allocation3], 256  }
 0x192   :  { %245 = vsyncadd [#allocation3], 4294967040 }
 0x193   :  { %184 = vsyncpa [#allocation3], 1 }

</bundles_post_ra>
